<compile_context>
chip_gen: v7x
topology: tpu7x:2x2x1
jax: 0.10.0
libtpu: 0.0.40
codegen_flags: <defaults>
</compile_context>

<pallas_src>
import functools

import jax
import jax.numpy as jnp
import numpy as np
from jax.experimental import pallas as pl
from jax.experimental.pallas import tpu as pltpu


def _silu(x):
    return x * jax.nn.sigmoid(x)


def _round_up(n, m):
    return (n + m - 1) // m * m


def _complex_bitcast_supported():
    """True iff lax.bitcast_convert_type round-trips complex64 <-> f32[...,2].

    XLA's BitcastConvert historically rejects complex element types, so we
    probe (trace + compile + memory-order check) instead of assuming."""
    try:
        def roundtrip(a):
            f = jax.lax.bitcast_convert_type(a, jnp.float32)        # [..., 2]
            return f, jax.lax.bitcast_convert_type(f, jnp.complex64)

        z = jnp.asarray([[1.0 + 2.0j]], dtype=jnp.complex64)
        f, z2 = jax.jit(roundtrip)(z)
        f = np.asarray(f)
        z2 = np.asarray(z2)
        return (f.shape == (1, 1, 2)
                and float(f[0, 0, 0]) == 1.0 and float(f[0, 0, 1]) == 2.0
                and complex(z2[0, 0]) == (1.0 + 2.0j))
    except Exception:
        return False


_HAS_COMPLEX_BITCAST = _complex_bitcast_supported()


# --------------------------------------------------------------------------
# Kernel: fused 3-layer (complex) MLP on a row tile.
#   x_ref : [tm, 2*cond]      f32, interleaved (re, im) lanes
#   wK_ref: [2*din, 2*dout]   packed complex block matrix (bf16)
#   bK_ref: [1, 2*dout]       packed bias (f32)
#   o_ref : [tm, 2*hidden]    f32, interleaved (re, im) lanes
# --------------------------------------------------------------------------
def mlp_cond_kernel(x_ref, w1_ref, b1_ref, w2_ref, b2_ref, w3_ref, b3_ref,
                    o_ref):
    cdt = w1_ref.dtype   # MXU compute dtype (bf16)

    h = jnp.dot(x_ref[...].astype(cdt), w1_ref[...],
                preferred_element_type=jnp.float32) + b1_ref[...]
    h = _silu(h).astype(cdt)                       # cast early: less spill
    h = jnp.dot(h, w2_ref[...],
                preferred_element_type=jnp.float32) + b2_ref[...]
    h = _silu(h).astype(cdt)                       # [tm, 8*hidden] kept bf16
    h = jnp.dot(h, w3_ref[...],
                preferred_element_type=jnp.float32) + b3_ref[...]

    o_ref[...] = h.astype(o_ref.dtype)


# --------------------------------------------------------------------------
# Wrapper
# --------------------------------------------------------------------------
@functools.partial(jax.jit, static_argnames=("tm",))
def mlp_condition_embedding(c, packed, *, tm=1024):
    c = jnp.asarray(c, dtype=jnp.complex64)
    cond_dim = c.shape[-1]
    lead = c.shape[:-1]
    hidden2 = packed["w3"].shape[1]          # 2 * hidden_dim
    hidden = hidden2 // 2

    # ---- input: complex64 -> interleaved f32 slab [N, 2*cond] -------------
    if _HAS_COMPLEX_BITCAST:
        x = jax.lax.bitcast_convert_type(c, jnp.float32)     # free view [...,2]
    else:
        x = jnp.stack([jnp.real(c), jnp.imag(c)], axis=-1)   # one fused pass
    x = x.reshape(-1, 2 * cond_dim)
    n_rows = x.shape[0]

    # ---- tiling / VMEM budget ----------------------------------------------
    args = (packed["w1"], packed["b1"], packed["w2"], packed["b2"],
            packed["w3"], packed["b3"])
    bytes_w = int(sum(int(a.size) * a.dtype.itemsize for a in args))

    # Per-row VMEM: double-buffered f32 in/out blocks + live activations.
    per_row = (2 * (2 * cond_dim) * 4        # input block  x2 (f32)
               + 2 * hidden2 * 4             # output block x2 (f32)
               + 4 * hidden2 * (4 + 2)       # layer-2 act (f32 + bf16 copy)
               + hidden2 * (4 + 2))          # layer-1/3 act
    vmem_budget = 48 * 1024 * 1024           # conservative for v7x (64 MiB)
    tm_budget = max(16, ((vmem_budget - 2 * bytes_w) // per_row) // 16 * 16)

    if n_rows < 16:
        tm_eff = n_rows                      # single full-extent block
    else:
        tm_eff = min(_round_up(tm, 16), (n_rows // 16) * 16, tm_budget)
        # Keep >= 2 grid steps when there are enough rows so v7x megacore can
        # shard the "parallel" row axis across both TensorCores.
        if n_rows >= 32 and pl.cdiv(n_rows, tm_eff) < 2:
            tm_eff = max(16, _round_up((n_rows + 1) // 2, 16))
    grid = pl.cdiv(n_rows, tm_eff)

    vmem_need = 2 * bytes_w + tm_eff * per_row + (4 << 20)
    vmem_limit = int(min(max(vmem_need, 32 << 20), 56 << 20))

    def row_spec(d):
        return pl.BlockSpec((tm_eff, d), lambda i: (i, 0))

    def full_spec(a):
        # Grid-invariant blocks: fetched once, kept resident across row tiles.
        # (For very large hidden on v7x these could be single-buffered /
        #  streamed; not needed at these sizes.)
        return pl.BlockSpec(a.shape, lambda i: (0,) * a.ndim)

    y = pl.pallas_call(
        mlp_cond_kernel,
        out_shape=jax.ShapeDtypeStruct((n_rows, hidden2), jnp.float32),
        grid_spec=pltpu.PrefetchScalarGridSpec(
            num_scalar_prefetch=0,
            grid=(grid,),
            in_specs=[row_spec(2 * cond_dim)] + [full_spec(a) for a in args],
            out_specs=row_spec(hidden2),
        ),
        compiler_params=pltpu.CompilerParams(
            dimension_semantics=("parallel",),
            vmem_limit_bytes=vmem_limit),
    )(x, *args)

    # ---- output: interleaved f32 [N, 2*hidden] -> complex64 [N, hidden] ----
    y = y.reshape(n_rows, hidden, 2)
    if _HAS_COMPLEX_BITCAST:
        out = jax.lax.bitcast_convert_type(y, jnp.complex64)  # free view
    else:
        out = jax.lax.complex(y[..., 0], y[..., 1])           # one fused pass
    return out.reshape(*lead, hidden)


# --------------------------------------------------------------------------
# Parameters
# --------------------------------------------------------------------------
def init_params(key, cond_dim, hidden_dim):
    """Raw per-layer params; matches init_weight_norm (W ~ N(0, 0.02), b = 0).
    Linear weights stored pre-transposed as [din, dout]."""
    ks = jax.random.split(key, 6)

    def lin(k, din, dout):
        w = jax.random.normal(k, (dout, din), jnp.float32) * 0.02
        return w.T, jnp.zeros((dout,), jnp.float32)

    w1r, b1r = lin(ks[0], cond_dim, hidden_dim)
    w1i, b1i = lin(ks[1], cond_dim, hidden_dim)
    w2r, b2r = lin(ks[2], hidden_dim, hidden_dim * 4)
    w2i, b2i = lin(ks[3], hidden_dim, hidden_dim * 4)
    w3r, b3r = lin(ks[4], hidden_dim * 4, hidden_dim)
    w3i, b3i = lin(ks[5], hidden_dim * 4, hidden_dim)
    return dict(w1r=w1r, w1i=w1i, b1r=b1r, b1i=b1i,
                w2r=w2r, w2i=w2i, b2r=b2r, b2i=b2i,
                w3r=w3r, w3i=w3i, b3r=b3r, b3i=b3i)


def pack_params(params, compute_dtype=jnp.bfloat16):
    """Pack each ComplexLinear into one real block matrix + bias.

      [zr | zi] @ [[wr, wi], [-wi, wr]] = [zr@wr - zi@wi | zi@wr + zr@wi]
      bias = [br - bi | br + bi]

    w1: ROWS permuted to interleaved (re0, im0, ...) order -> consumes the
        bitcast/stacked view of the complex64 input directly.
    w3/b3: COLUMNS permuted to interleaved order -> kernel output bitcasts
        straight back to complex64."""
    def pack_first(wr, wi, br, bi):                   # interleaved rows
        top = jnp.concatenate([wr, wi], axis=1)       # contribution of re_j
        bot = jnp.concatenate([-wi, wr], axis=1)      # contribution of im_j
        d, dout2 = top.shape
        w = jnp.stack([top, bot], axis=1).reshape(2 * d, dout2)
        b = jnp.concatenate([br - bi, br + bi])[None, :]
        return w.astype(compute_dtype), b.astype(jnp.float32)

    def pack_mid(wr, wi, br, bi):                     # plain [re | im] block
        w = jnp.concatenate(
            [jnp.concatenate([wr, wi], axis=1),
             jnp.concatenate([-wi, wr], axis=1)], axis=0)
        b = jnp.concatenate([br - bi, br + bi])[None, :]
        return w.astype(compute_dtype), b.astype(jnp.float32)

    def pack_last(wr, wi, br, bi):                    # interleaved columns
        col_re = jnp.concatenate([wr, -wi], axis=0)   # -> out real_j
        col_im = jnp.concatenate([wi, wr], axis=0)    # -> out imag_j
        din2, dout = col_re.shape
        w = jnp.stack([col_re, col_im], axis=2).reshape(din2, 2 * dout)
        b = jnp.stack([br - bi, br + bi], axis=1).reshape(1, -1)
        return w.astype(compute_dtype), b.astype(jnp.float32)

    w1, b1 = pack_first(params["w1r"], params["w1i"], params["b1r"], params["b1i"])
    w2, b2 = pack_mid(params["w2r"], params["w2i"], params["b2r"], params["b2i"])
    w3, b3 = pack_last(params["w3r"], params["w3i"], params["b3r"], params["b3i"])
    return dict(w1=w1, b1=b1, w2=w2, b2=b2, w3=w3, b3=b3)


# --------------------------------------------------------------------------
# Pure-JAX reference (f32) of the PyTorch module, for correctness checking.
# --------------------------------------------------------------------------
def reference_forward(c, params):
    xr = jnp.real(c).astype(jnp.float32)
    xi = jnp.imag(c).astype(jnp.float32)

    def clinear(zr, zi, wr, wi, br, bi):
        rr = zr @ wr + br
        ri = zi @ wr + br
        ir = zr @ wi + bi
        ii = zi @ wi + bi
        return rr - ii, ri + ir

    hr, hi = clinear(xr, xi, params["w1r"], params["w1i"],
                     params["b1r"], params["b1i"])
    hr, hi = _silu(hr), _silu(hi)
    hr, hi = clinear(hr, hi, params["w2r"], params["w2i"],
                     params["b2r"], params["b2i"])
    hr, hi = _silu(hr), _silu(hi)
    hr, hi = clinear(hr, hi, params["w3r"], params["w3i"],
                     params["b3r"], params["b3i"])
    return jax.lax.complex(hr, hi)


if __name__ == "__main__":
    cond_dim = 16
    hidden_dim = 64      # 2*hidden = 128 -> lane-dense output slab
    batch, seq = 2, 8    # 16 rows -> single full-rows block in the demo

    key = jax.random.PRNGKey(0)
    k_param, k_re, k_im = jax.random.split(key, 3)

    params = init_params(k_param, cond_dim, hidden_dim)
    packed = pack_params(params, compute_dtype=jnp.bfloat16)

    c_re = jax.random.normal(k_re, (batch, seq, cond_dim), jnp.float32)
    c_im = jax.random.normal(k_im, (batch, seq, cond_dim), jnp.float32)
    c = jax.lax.complex(c_re, c_im)          # complex64 condition input

    out = mlp_condition_embedding(c, packed, tm=1024)
    out = jax.block_until_ready(out)

    ref = reference_forward(c, params)
    # bf16 MXU inputs (f32 accumulation) -> loosened tolerance vs. f32 ref.
    np.testing.assert_allclose(np.asarray(out), np.asarray(ref),
                               rtol=3e-2, atol=2e-4)

    assert out.shape == (batch, seq, hidden_dim)
    assert out.dtype == jnp.complex64
    print("KERNEL_OK")
</pallas_src>

<mosaic_0001>
module attributes {stable_mosaic.version = 11 : i64} {
  func.func @mlp_cond_kernel(%arg0: i32, %arg1: memref<16x32xf32, #tpu.memory_space<vmem>>, %arg2: memref<32x128xbf16, #tpu.memory_space<vmem>>, %arg3: memref<1x128xf32, #tpu.memory_space<vmem>>, %arg4: memref<128x512xbf16, #tpu.memory_space<vmem>>, %arg5: memref<1x512xf32, #tpu.memory_space<vmem>>, %arg6: memref<512x128xbf16, #tpu.memory_space<vmem>>, %arg7: memref<1x128xf32, #tpu.memory_space<vmem>>, %arg8: memref<16x128xf32, #tpu.memory_space<vmem>>) attributes {dimension_semantics = [#tpu.dimension_semantics<parallel>], iteration_bounds = array<i64: 1>, scalar_prefetch = 0 : i64, scratch_operands = 0 : i64, tpu.core_type = #tpu.core_type<tc>, window_params = [{transform_indices = @transform_0, window_bounds = array<i64: 16, 32>}, {pipeline_mode = #tpu.pipeline_mode<synchronous>, transform_indices = @transform_1, window_bounds = array<i64: 32, 128>}, {pipeline_mode = #tpu.pipeline_mode<synchronous>, transform_indices = @transform_2, window_bounds = array<i64: 1, 128>}, {pipeline_mode = #tpu.pipeline_mode<synchronous>, transform_indices = @transform_3, window_bounds = array<i64: 128, 512>}, {pipeline_mode = #tpu.pipeline_mode<synchronous>, transform_indices = @transform_4, window_bounds = array<i64: 1, 512>}, {pipeline_mode = #tpu.pipeline_mode<synchronous>, transform_indices = @transform_5, window_bounds = array<i64: 512, 128>}, {pipeline_mode = #tpu.pipeline_mode<synchronous>, transform_indices = @transform_6, window_bounds = array<i64: 1, 128>}, {transform_indices = @transform_7, window_bounds = array<i64: 16, 128>}]} {
    %c0 = arith.constant 0 : index
    %c0_0 = arith.constant 0 : index
    %0 = vector.load %arg1[%c0, %c0_0] : memref<16x32xf32, #tpu.memory_space<vmem>>, vector<16x32xf32>
    %1 = arith.truncf %0 : vector<16x32xf32> to vector<16x32xbf16>
    %c0_1 = arith.constant 0 : index
    %c0_2 = arith.constant 0 : index
    %2 = vector.load %arg2[%c0_1, %c0_2] : memref<32x128xbf16, #tpu.memory_space<vmem>>, vector<32x128xbf16>
    %cst = arith.constant dense<0.000000e+00> : vector<16x128xf32>
    %3 = tpu.matmul %1, %2, %cst {dimension_numbers = #tpu.dot_dimension_numbers<[1], [0], [0], [1], [0, 0, 1, 1], [], []>} : vector<16x32xbf16>, vector<32x128xbf16>, vector<16x128xf32> -> vector<16x128xf32>
    %c0_3 = arith.constant 0 : index
    %c0_4 = arith.constant 0 : index
    %4 = vector.load %arg3[%c0_3, %c0_4] : memref<1x128xf32, #tpu.memory_space<vmem>>, vector<1x128xf32>
    %5 = vector.broadcast %4 : vector<1x128xf32> to vector<16x128xf32>
    %6 = arith.addf %3, %5 : vector<16x128xf32>
    %7 = arith.negf %6 : vector<16x128xf32>
    %8 = math.exp %7 : vector<16x128xf32>
    %cst_5 = arith.constant 1.000000e+00 : f32
    %9 = vector.broadcast %cst_5 : f32 to vector<16x128xf32>
    %10 = arith.addf %9, %8 : vector<16x128xf32>
    %11 = arith.divf %9, %10 : vector<16x128xf32>
    %12 = arith.mulf %6, %11 : vector<16x128xf32>
    %13 = arith.truncf %12 : vector<16x128xf32> to vector<16x128xbf16>
    %c0_6 = arith.constant 0 : index
    %c0_7 = arith.constant 0 : index
    %14 = vector.load %arg4[%c0_6, %c0_7] : memref<128x512xbf16, #tpu.memory_space<vmem>>, vector<128x512xbf16>
    %cst_8 = arith.constant dense<0.000000e+00> : vector<16x512xf32>
    %15 = tpu.matmul %13, %14, %cst_8 {dimension_numbers = #tpu.dot_dimension_numbers<[1], [0], [0], [1], [0, 0, 1, 1], [], []>} : vector<16x128xbf16>, vector<128x512xbf16>, vector<16x512xf32> -> vector<16x512xf32>
    %c0_9 = arith.constant 0 : index
    %c0_10 = arith.constant 0 : index
    %16 = vector.load %arg5[%c0_9, %c0_10] : memref<1x512xf32, #tpu.memory_space<vmem>>, vector<1x512xf32>
    %17 = vector.broadcast %16 : vector<1x512xf32> to vector<16x512xf32>
    %18 = arith.addf %15, %17 : vector<16x512xf32>
    %19 = arith.negf %18 : vector<16x512xf32>
    %20 = math.exp %19 : vector<16x512xf32>
    %cst_11 = arith.constant 1.000000e+00 : f32
    %21 = vector.broadcast %cst_11 : f32 to vector<16x512xf32>
    %22 = arith.addf %21, %20 : vector<16x512xf32>
    %23 = arith.divf %21, %22 : vector<16x512xf32>
    %24 = arith.mulf %18, %23 : vector<16x512xf32>
    %25 = arith.truncf %24 : vector<16x512xf32> to vector<16x512xbf16>
    %c0_12 = arith.constant 0 : index
    %c0_13 = arith.constant 0 : index
    %26 = vector.load %arg6[%c0_12, %c0_13] : memref<512x128xbf16, #tpu.memory_space<vmem>>, vector<512x128xbf16>
    %cst_14 = arith.constant dense<0.000000e+00> : vector<16x128xf32>
    %27 = tpu.matmul %25, %26, %cst_14 {dimension_numbers = #tpu.dot_dimension_numbers<[1], [0], [0], [1], [0, 0, 1, 1], [], []>} : vector<16x512xbf16>, vector<512x128xbf16>, vector<16x128xf32> -> vector<16x128xf32>
    %c0_15 = arith.constant 0 : index
    %c0_16 = arith.constant 0 : index
    %28 = vector.load %arg7[%c0_15, %c0_16] : memref<1x128xf32, #tpu.memory_space<vmem>>, vector<1x128xf32>
    %29 = vector.broadcast %28 : vector<1x128xf32> to vector<16x128xf32>
    %30 = arith.addf %27, %29 : vector<16x128xf32>
    %c0_17 = arith.constant 0 : index
    %c0_18 = arith.constant 0 : index
    %31 = vector.load %arg8[%c0_17, %c0_18] : memref<16x128xf32, #tpu.memory_space<vmem>>, vector<16x128xf32>
    tpu.vector_store %arg8[%c0_17, %c0_18], %30 {strides = array<i32>} : memref<16x128xf32, #tpu.memory_space<vmem>>, vector<16x128xf32>,
    return
  }
  func.func @transform_0(%arg0: i32) -> (i32, i32) {
    %c0_i32 = arith.constant 0 : i32
    %c0_i32_0 = arith.constant 0 : i32
    return %arg0, %c0_i32 : i32, i32
  }
  func.func @transform_1(%arg0: i32) -> (i32, i32) {
    %c0_i32 = arith.constant 0 : i32
    %c0_i32_0 = arith.constant 0 : i32
    %c0_i32_1 = arith.constant 0 : i32
    return %c0_i32, %c0_i32_0 : i32, i32
  }
  func.func @transform_2(%arg0: i32) -> (i32, i32) {
    %c0_i32 = arith.constant 0 : i32
    %c0_i32_0 = arith.constant 0 : i32
    %c0_i32_1 = arith.constant 0 : i32
    return %c0_i32, %c0_i32_0 : i32, i32
  }
  func.func @transform_3(%arg0: i32) -> (i32, i32) {
    %c0_i32 = arith.constant 0 : i32
    %c0_i32_0 = arith.constant 0 : i32
    %c0_i32_1 = arith.constant 0 : i32
    return %c0_i32, %c0_i32_0 : i32, i32
  }
  func.func @transform_4(%arg0: i32) -> (i32, i32) {
    %c0_i32 = arith.constant 0 : i32
    %c0_i32_0 = arith.constant 0 : i32
    %c0_i32_1 = arith.constant 0 : i32
    return %c0_i32, %c0_i32_0 : i32, i32
  }
  func.func @transform_5(%arg0: i32) -> (i32, i32) {
    %c0_i32 = arith.constant 0 : i32
    %c0_i32_0 = arith.constant 0 : i32
    %c0_i32_1 = arith.constant 0 : i32
    return %c0_i32, %c0_i32_0 : i32, i32
  }
  func.func @transform_6(%arg0: i32) -> (i32, i32) {
    %c0_i32 = arith.constant 0 : i32
    %c0_i32_0 = arith.constant 0 : i32
    %c0_i32_1 = arith.constant 0 : i32
    return %c0_i32, %c0_i32_0 : i32, i32
  }
  func.func @transform_7(%arg0: i32) -> (i32, i32) {
    %c0_i32 = arith.constant 0 : i32
    %c0_i32_0 = arith.constant 0 : i32
    return %arg0, %c0_i32 : i32, i32
  }
}

</mosaic_0001>

<bundles_post_ra>
// kernel: custom-call.1
= control target key start
LH: loop header
LB: loop body
LE: loop exit
PB: predicated region body
PF: predicated region fallthrough
CT: control target
= control target key end

     0   :  { %s59_s0 = inlined_call_operand.hbm [shape: c64[2,8,16], index: 0, kind: input, shape index: {}]   ;;  %s60_s1 = inlined_call_operand.vmem [shape: f32[2,8,16], index: 1, kind: output, shape index: {}]  }
   0x1   :  { %s2_s8 = scalar_lea.hbm %s59_s0, 256 }
   0x2   :  { %3 = vsyncpa [#allocation0], 0  ;;  %s4_s11 = sshll.u32 %s60_s1, 4  ;;  %s34_s14 = scalar_lea.hbm %s59_s0, 512  ;;  %s5_s11 = int_to_ptr.vmem [resolvable:$true] %s4_s11 }
   0x3   :  { %p11_p0 = scmp.ne.s32.totalorder %s2_s8, %s34_s14  ;;  %p13_p1 = scmp.lt.u32.totalorder %s2_s8, %s59_s0 }
   0x4   :  { %p14_p2 = scmp.lt.u32.totalorder %s34_s14, %s34_s14  ;;  %p16_p4 = scmp.lt.u32.totalorder %s34_s14, %s2_s8 }
   0x6   :  { %p15_p3 = por %p14_p2, %p13_p1 }
   0x8   :  { %p17_p5 = por %p16_p4, %p15_p3 }
   0xa   :  { %p18_p6 = pnand %p17_p5, %p11_p0 }
   0xc   :  { %21 = shalt.err (!%p18_p6)  }
   0xd   :  { %s22_s17 = scalar_lea.vmem %s5_s11, 256  ;;  %p27_p8 = scmp.lt.s32.totalorder %s5_s11, %s5_s11 }
   0xe   :  { %p23_p7 = scmp.ne.s32.totalorder %s5_s11, %s22_s17  ;;  %p28_p9 = scmp.lt.s32.totalorder %s22_s17, %s22_s17 }
  0x10   :  { %p29_p10 = por %p28_p9, %p27_p8 }
  0x12   :  { %p30_p11 = pnand %p29_p10, %p23_p7 }
  0x14   :  { %33 = shalt.err (!%p30_p11)  }
  0x15   :  { %7 = dma.hbm_to_vmem [thread:$0]  %s2_s8, 256, %s5_s11, [#allocation0] }
  0x16   :  { %35 = dma.done.wait [#allocation0], 256  }
  0x17   :  { %36 = vsyncadd [#allocation0], 4294967040 }
  0x18   :  { %9 = vsyncpa [#allocation0], 1 }

// kernel: custom-call
= control target key start
LH: loop header
LB: loop body
LE: loop exit
PB: predicated region body
PF: predicated region fallthrough
CT: control target
= control target key end

     0   :  { %2 = vsyncpa [#allocation0], 0  ;;  %s61_s0 = inlined_call_operand.hbm [shape: c64[2,8,16], index: 0, kind: input, shape index: {}]   ;;  %s62_s1 = inlined_call_operand.vmem [shape: f32[2,8,16], index: 1, kind: output, shape index: {}]  }
   0x1   :  { %s3_s8 = sshll.u32 %s62_s1, 4  ;;  %s9_s11 = scalar_lea.hbm %s61_s0, 256  ;;  %s4_s8 = int_to_ptr.vmem [resolvable:$true] %s3_s8 }
   0x2   :  { %p10_p0 = scmp.ne.s32.totalorder %s61_s0, %s9_s11  ;;  %s11_s16 = scalar_lea.hbm %s61_s0, 512 }
   0x3   :  { %p12_p1 = scmp.lt.u32.totalorder %s11_s16, %s9_s11  ;;  %p13_p2 = scmp.lt.u32.totalorder %s9_s11, %s61_s0 }
   0x5   :  { %p14_p3 = por %p13_p2, %p12_p1 }
   0x7   :  { %p15_p4 = pnand %p14_p3, %p10_p0 }
   0x9   :  { %18 = shalt.err (!%p15_p4)  }
   0xa   :  { %s19_s1 = scalar_lea.vmem %s4_s8, 256  ;;  %p24_p6 = scmp.lt.s32.totalorder %s4_s8, %s4_s8 }
   0xb   :  { %p20_p5 = scmp.ne.s32.totalorder %s4_s8, %s19_s1  ;;  %p25_p7 = scmp.lt.s32.totalorder %s19_s1, %s19_s1 }
   0xd   :  { %p26_p8 = por %p25_p7, %p24_p6 }
   0xf   :  { %p27_p9 = pnand %p26_p8, %p20_p5 }
  0x11   :  { %30 = shalt.err (!%p27_p9)  }
  0x12   :  { %6 = dma.hbm_to_vmem [thread:$0]  %s61_s0, 256, %s4_s8, [#allocation0] }
  0x13   :  { %31 = dma.done.wait [#allocation0], 256  }
  0x14   :  { %32 = vsyncadd [#allocation0], 4294967040 }
  0x15   :  { %8 = vsyncpa [#allocation0], 1 }

// kernel: custom-call.2
= control target key start
LH: loop header
LB: loop body
LE: loop exit
PB: predicated region body
PF: predicated region fallthrough
CT: control target
= control target key end

     0   :  { %s126_s0 = inlined_call_operand.vmem [shape: f32[2,8,64], index: 0, kind: input, shape index: {}]   ;;  %s127_s1 = inlined_call_operand.vmem [shape: f32[2,8,64], index: 1, kind: input, shape index: {}]   ;;  %s128_s2 = inlined_call_operand.hbm [shape: c64[2,8,64], index: 2, kind: output, shape index: {}]  }
   0x1   :  { %s87_s11 = scalar_lea.hbm %s128_s2, 256 }
   0x2   :  { %4 = vsyncpa [#allocation0], 0  ;;  %s5_s14 = sshll.u32 %s126_s0, 4  ;;  %s6_s14 = int_to_ptr.vmem [resolvable:$true] %s5_s14 }
   0x3   :  { %s18_s15 = scalar_lea.vmem %s6_s14, 256  ;;  %p23_p1 = scmp.lt.s32.totalorder %s6_s14, %s6_s14 }
   0x4   :  { %p19_p0 = scmp.ne.s32.totalorder %s6_s14, %s18_s15  ;;  %p24_p2 = scmp.lt.s32.totalorder %s18_s15, %s18_s15 }
   0x6   :  { %p25_p3 = por %p24_p2, %p23_p1 }
   0x8   :  { %p26_p4 = pnand %p25_p3, %p19_p0 }
   0xa   :  { %29 = shalt.err (!%p26_p4)  }
   0xb   :  { %p31_p5 = scmp.ne.s32.totalorder %s128_s2, %s87_s11  ;;  %s32_s0 = scalar_lea.hbm %s128_s2, 512 }
   0xc   :  { %p33_p6 = scmp.lt.u32.totalorder %s32_s0, %s87_s11  ;;  %p34_p7 = scmp.lt.u32.totalorder %s87_s11, %s128_s2 }
   0xe   :  { %p35_p8 = por %p34_p7, %p33_p6 }
  0x10   :  { %p36_p9 = pnand %p35_p8, %p31_p5 }
  0x12   :  { %39 = shalt.err (!%p36_p9)  }
  0x13   :  { %8 = dma.vmem_to_hbm [thread:$0]  %s6_s14, 256, %s128_s2, [#allocation0] }
  0x14   :  { %65 = dma.done.wait [#allocation0], 256  }
  0x15   :  { %66 = vsyncadd [#allocation0], 4294967040 }
  0x16   :  { %10 = vsyncpa [#allocation0], 1 }
  0x17   :  { %11 = vsyncpa [#allocation1], 0  ;;  %s12_s28 = sshll.u32 %s127_s1, 4  ;;  %s13_s28 = int_to_ptr.vmem [resolvable:$true] %s12_s28 }
  0x18   :  { %s40_s29 = scalar_lea.vmem %s13_s28, 256  ;;  %p45_p11 = scmp.lt.s32.totalorder %s13_s28, %s13_s28 }
  0x19   :  { %p41_p10 = scmp.ne.s32.totalorder %s13_s28, %s40_s29  ;;  %p46_p12 = scmp.lt.s32.totalorder %s40_s29, %s40_s29 }
  0x1b   :  { %p47_p13 = por %p46_p12, %p45_p11 }
  0x1d   :  { %p48_p0 = pnand %p47_p13, %p41_p10 }
  0x1f   :  { %51 = shalt.err (!%p48_p0)  }
  0x20   :  { %p53_p1 = scmp.ne.s32.totalorder %s87_s11, %s32_s0  ;;  %p56_p2 = scmp.lt.u32.totalorder %s32_s0, %s32_s0 }
  0x22   :  { %p57_p3 = por %p56_p2, %p34_p7 }
  0x24   :  { %p59_p4 = por %p57_p3, %p33_p6 }
  0x26   :  { %p60_p5 = pnand %p59_p4, %p53_p1 }
  0x28   :  { %63 = shalt.err (!%p60_p5)  }
  0x29   :  { %15 = dma.vmem_to_hbm [thread:$0]  %s13_s28, 256, %s87_s11, [#allocation1] }
  0x2a   :  { %67 = dma.done.wait [#allocation1], 256  }
  0x2b   :  { %68 = vsyncadd [#allocation1], 4294967040 }
  0x2c   :  { %17 = vsyncpa [#allocation1], 1 }

// kernel: mlp_condition_embedding.1
= control target key start
LH: loop header
LB: loop body
LE: loop exit
PB: predicated region body
PF: predicated region fallthrough
CT: control target
= control target key end

     0   :  { %12 = vsyncpa [#allocation3], 0  ;;  %s1125_s24 = smov [#allocation2]   ;;  %s1310_s0 = inlined_call_operand.vmem [shape: f32[16,32], index: 0, kind: input, shape index: {}]   ;;  %s1311_s1 = inlined_call_operand.vmem [shape: bf16[32,128], index: 1, kind: input, shape index: {}]   ;;  %s1312_s2 = inlined_call_operand.vmem [shape: f32[1,128], index: 2, kind: input, shape index: {}]   ;;  %s1313_s3 = inlined_call_operand.vmem [shape: bf16[128,512], index: 3, kind: input, shape index: {}]   ;;  %s1314_s4 = inlined_call_operand.vmem [shape: f32[1,512], index: 4, kind: input, shape index: {}]   ;;  %s1315_s5 = inlined_call_operand.hbm [shape: bf16[512,128], index: 5, kind: input, shape index: {}]   ;;  %s1316_s6 = inlined_call_operand.vmem [shape: f32[1,128], index: 6, kind: input, shape index: {}]   ;;  %s1317_s7 = inlined_call_operand.vmem [shape: f32[16,128], index: 7, kind: output, shape index: {}]  }
   0x1   :  { %s28_s25 = sshll.u32 %s1125_s24, 4  ;;  %s1101_s28 = scalar_lea.hbm %s1315_s5, 4096  ;;  %s29_s25 = int_to_ptr.vmem [resolvable:$true] %s28_s25 }
   0x2   :  { %p1102_p0 = scmp.ne.s32.totalorder %s1315_s5, %s1101_s28  ;;  %p1105_p1 = scmp.lt.u32.totalorder %s1101_s28, %s1315_s5 }
   0x4   :  { %p1107_p2 = pnand %p1105_p1, %p1102_p0 }
   0x6   :  { %1110 = shalt.err (!%p1107_p2)
}
   0x7   :  { %s1111_s10 = scalar_lea.vmem %s29_s25, 4096  ;;  %p1116_p4 = scmp.lt.s32.totalorder %s29_s25, %s29_s25 }
   0x8   :  { %p1112_p3 = scmp.ne.s32.totalorder %s29_s25, %s1111_s10  ;;  %p1117_p5 = scmp.lt.s32.totalorder %s1111_s10, %s1111_s10 }
   0xa   :  { %p1118_p6 = por %p1117_p5, %p1116_p4 }
   0xc   :  { %p1119_p7 = pnand %p1118_p6, %p1112_p3 }
   0xe   :  { %1122 = shalt.err (!%p1119_p7)
}
   0xf   :  { %s1126_s11 = smov 64   ;;  %s1127_s12 = smov 4  }
  0x10   :  { %34 = dma.hbm_to_vmem [thread:$0]  %s1315_s5, 4096, %s29_s25, [#allocation3], %s1126_s11, %s1126_s11, %s1127_s12  }
  0x11   :  { %1123 = dma.done.wait [#allocation3], 4096  }
  0x12   :  { %1124 = vsyncadd [#allocation3], 4294963200  ;;  %v1128_v0 = vmov 0.0   ;;  %vm1129_vm0 = vmmov 0   ;;  %v979_v1 = vld [vmem:[%s1311_s1] sm:$0xff]   ;;  %v980_v2 = vld [vmem:[%s1311_s1 + $0x8] sm:$0xff]  }
  0x13   :  { %965 = vmatprep.subr.bf16.mxu0 %v1128_v0  ;;  %969 = vmatprep.mubr.msk.bf16.mxu0 %vm1129_vm0, %v1128_v0  ;;  %v41_v3 = vld [vmem:[%s1310_s0] sm:$0xff]  ;;  %v42_v4 = vld [vmem:[%s1310_s0 + $0x8] sm:$0xff]  ;;  %vm67_vm1 = vcmask 261120   ;;  %v1130_v38 = vmov 0  }
  0x14   :  { %966 = vmatpush3.bf16.msra.mxu0 %v979_v1  ;;  %v43_v5 = vpack.c.bf16 %v42_v4, %v41_v3  ;;  %v981_v6 = vld [vmem:[%s1313_s3 + $0x4] ss:$16 sps:$4 sm:$0xff]   ;;  %v985_v7 = vld [vmem:[%s1313_s3 + $0xc] ss:$16 sps:$4 sm:$0xff]   ;;  %v983_v8 = vld [vmem:[%s1313_s3 + $0x8] ss:$16 sps:$4 sm:$0xff]   ;;  %373 = vmatprep.mubr.bf16.mxu1 %v1130_v38 }
  0x15   :  { %967 = vmatprep.subr.bf16.mxu0 %v1128_v0  ;;  %v986_v9 = vld [vmem:[%s1313_s3] ss:$16 sps:$4 sm:$0xff]   ;;  %341 = vmatprep.subr.bf16.mxu1 %v981_v6  ;;  %v987_v10 = vld [vmem:[%s1313_s3 + $0x24] ss:$16 sps:$4 sm:$0xff]   ;;  %v991_v11 = vld [vmem:[%s1313_s3 + $0x2c] ss:$16 sps:$4 sm:$0xff]  }
  0x16   :  { %342 = vmatpush1.bf16.msra.mxu1 %v986_v9  ;;  %v989_v12 = vld [vmem:[%s1313_s3 + $0x28] ss:$16 sps:$4 sm:$0xff]   ;;  %v992_v13 = vld [vmem:[%s1313_s3 + $0x20] ss:$16 sps:$4 sm:$0xff]   ;;  %v993_v14 = vld [vmem:[%s1313_s3 + $0x44] ss:$16 sps:$4 sm:$0xff]  }
  0x17   :  { %343 = vmatprep.subr.bf16.mxu1 %v987_v10  ;;  %v997_v15 = vld [vmem:[%s1313_s3 + $0x4c] ss:$16 sps:$4 sm:$0xff]   ;;  %v995_v16 = vld [vmem:[%s1313_s3 + $0x48] ss:$16 sps:$4 sm:$0xff]   ;;  %v998_v17 = vld [vmem:[%s1313_s3 + $0x40] ss:$16 sps:$4 sm:$0xff]  }
  0x18   :  { %968 = vmatpush3.bf16.msra.mxu0 %v980_v2  ;;  %v999_v18 = vld [vmem:[%s1313_s3 + $0x64] ss:$16 sps:$4 sm:$0xff]   ;;  %v1003_v19 = vld [vmem:[%s1313_s3 + $0x6c] ss:$16 sps:$4 sm:$0xff]   ;;  %v1001_v20 = vld [vmem:[%s1313_s3 + $0x68] ss:$16 sps:$4 sm:$0xff]  }
  0x19   :  { %384 = vmatprep.subr.bf16.mxu0 %v985_v7  ;;  %v1004_v21 = vld [vmem:[%s1313_s3 + $0x60] ss:$16 sps:$4 sm:$0xff]   ;;  %v1005_v22 = vld [vmem:[%s1313_s3 + $0x84] ss:$16 sps:$4 sm:$0xff]   ;;  %v1009_v23 = vld [vmem:[%s1313_s3 + $0x8c] ss:$16 sps:$4 sm:$0xff]  }
  0x1a   :  { %344 = vmatpush1.bf16.msra.mxu1 %v992_v13  ;;  %v1007_v24 = vld [vmem:[%s1313_s3 + $0x88] ss:$16 sps:$4 sm:$0xff]   ;;  %v1010_v25 = vld [vmem:[%s1313_s3 + $0x80] ss:$16 sps:$4 sm:$0xff]   ;;  %v1011_v26 = vld [vmem:[%s1313_s3 + $0xa4] ss:$16 sps:$4 sm:$0xff]  }
  0x1b   :  { %970 = vmatmul.mubr.msk.bf16.vlgmr.msra.gmra.mrb[0].mxu0 %vm67_vm1, %v43_v5  ;;  %345 = vmatprep.subr.bf16.mxu1 %v993_v14  ;;  %v1015_v27 = vld [vmem:[%s1313_s3 + $0xac] ss:$16 sps:$4 sm:$0xff]   ;;  %v1013_v28 = vld [vmem:[%s1313_s3 + $0xa8] ss:$16 sps:$4 sm:$0xff]   ;;  %v1016_v29 = vld [vmem:[%s1313_s3 + $0xa0] ss:$16 sps:$4 sm:$0xff]  }
  0x1c   :  { %385 = vmatpush1.bf16.msra.mxu0 %v983_v8  ;;  %v1017_v30 = vld [vmem:[%s1313_s3 + $0xc4] ss:$16 sps:$4 sm:$0xff]   ;;  %v1021_v31 = vld [vmem:[%s1313_s3 + $0xcc] ss:$16 sps:$4 sm:$0xff]   ;;  %v1019_v32 = vld [vmem:[%s1313_s3 + $0xc8] ss:$16 sps:$4 sm:$0xff]   ;;  %416 = vmatprep.mubr.bf16.mxu0 %v1130_v38 }
  0x1d   :  { %386 = vmatprep.subr.bf16.mxu0 %v991_v11  ;;  %v1022_v33 = vld [vmem:[%s1313_s3 + $0xc0] ss:$16 sps:$4 sm:$0xff]   ;;  %v1023_v34 = vld [vmem:[%s1313_s3 + $0xe4] ss:$16 sps:$4 sm:$0xff]   ;;  %v1027_v35 = vld [vmem:[%s1313_s3 + $0xec] ss:$16 sps:$4 sm:$0xff]  }
  0x1e   :  { %346 = vmatpush1.bf16.msra.mxu1 %v998_v17  ;;  %v1025_v36 = vld [vmem:[%s1313_s3 + $0xe8] ss:$16 sps:$4 sm:$0xff]   ;;  %v1028_v37 = vld [vmem:[%s1313_s3 + $0xe0] ss:$16 sps:$4 sm:$0xff]  }
  0x1f   :  { %347 = vmatprep.subr.bf16.mxu1 %v999_v18  ;;  %v839_v39 = vld [vmem:[%s1312_s2] ss:$0 sm:$0xff]  ;;  %v1033_v61 = vld [vmem:[#allocation2 + $0x48] sm:$0xff]   ;;  %v1037_v1 = vld [vmem:[#allocation2 + $0x50] sm:$0xff]  }
  0x20   :  { %387 = vmatpush1.bf16.msra.mxu0 %v989_v12  ;;  %v1029_v57 = vld [vmem:[#allocation2 + $0x40] sm:$0xff]   ;;  %v1034_v62 = vld [vmem:[#allocation2 + $0xc8] sm:$0xff]   ;;  %v1038_v2 = vld [vmem:[#allocation2 + $0xd0] sm:$0xff]  }
  0x21   :  { %388 = vmatprep.subr.bf16.mxu0 %v997_v15  ;;  %v1030_v58 = vld [vmem:[#allocation2 + $0xc0] sm:$0xff]   ;;  %v1035_v63 = vld [vmem:[#allocation2 + $0x8] sm:$0xff]   ;;  %v1039_v3 = vld [vmem:[#allocation2 + $0x10] sm:$0xff]  }
  0x22   :  { %348 = vmatpush1.bf16.msra.mxu1 %v1004_v21  ;;  %v1031_v59 = vld [vmem:[#allocation2] sm:$0xff]   ;;  %v1036_v0 = vld [vmem:[#allocation2 + $0x88] sm:$0xff]   ;;  %v1040_v4 = vld [vmem:[#allocation2 + $0x90] sm:$0xff]  }
  0x23   :  { %349 = vmatprep.subr.bf16.mxu1 %v1005_v22  ;;  %v1032_v60 = vld [vmem:[#allocation2 + $0x80] sm:$0xff]   ;;  %v1041_v5 = vld [vmem:[#allocation2 + $0x58] sm:$0xff]   ;;  %v1049_v13 = vld [vmem:[#allocation2 + $0x68] sm:$0xff]  }
  0x24   :  { %389 = vmatpush1.bf16.msra.mxu0 %v995_v16  ;;  %v1042_v6 = vld [vmem:[#allocation2 + $0xd8] sm:$0xff]   ;;  %v1045_v9 = vld [vmem:[#allocation2 + $0x60] sm:$0xff]   ;;  %v1050_v14 = vld [vmem:[#allocation2 + $0xe8] sm:$0xff]  }
  0x25   :  { %390 = vmatprep.subr.bf16.mxu0 %v1003_v19  ;;  %v1043_v7 = vld [vmem:[#allocation2 + $0x18] sm:$0xff]   ;;  %v1046_v10 = vld [vmem:[#allocation2 + $0xe0] sm:$0xff]   ;;  %v1051_v15 = vld [vmem:[#allocation2 + $0x28] sm:$0xff]  }
  0x26   :  { %350 = vmatpush1.bf16.msra.mxu1 %v1010_v25  ;;  %v1044_v8 = vld [vmem:[#allocation2 + $0x98] sm:$0xff]   ;;  %v1047_v11 = vld [vmem:[#allocation2 + $0x20] sm:$0xff]   ;;  %v1052_v16 = vld [vmem:[#allocation2 + $0xa8] sm:$0xff]   ;;  %v161_v25 = vlaneseq }
  0x27   :  { %351 = vmatprep.subr.bf16.mxu1 %v1011_v26  ;;  %v1048_v12 = vld [vmem:[#allocation2 + $0xa0] sm:$0xff]   ;;  %v1053_v17 = vld [vmem:[#allocation2 + $0x70] sm:$0xff]   ;;  %v1057_v21 = vld [vmem:[#allocation2 + $0x78] sm:$0xff]  }
  0x28   :  { %391 = vmatpush1.bf16.msra.mxu0 %v1001_v20  ;;  %v1054_v18 = vld [vmem:[#allocation2 + $0xf0] sm:$0xff]   ;;  %v1058_v22 = vld [vmem:[#allocation2 + $0xf8] sm:$0xff]   ;;  %v162_v26 = vshrl.u32 %v161_v25, 7 }
  0x29   :  { %392 = vmatprep.subr.bf16.mxu0 %v1009_v23  ;;  %v1055_v19 = vld [vmem:[#allocation2 + $0x30] sm:$0xff]   ;;  %v1059_v23 = vld [vmem:[#allocation2 + $0x38] sm:$0xff]  }
  0x2a   :  { %352 = vmatpush1.bf16.msra.mxu1 %v1016_v29  ;;  %v1056_v20 = vld [vmem:[#allocation2 + $0xb0] sm:$0xff]   ;;  %v159_v29 = vld [vmem:[%s1314_s4] sm:$0xf] }
  0x2b   :  { %353 = vmatprep.subr.bf16.mxu1 %v1017_v30  ;;  %v167_v30 = vsub.s32 1, %v162_v26 }
  0x2c   :  { %393 = vmatpush1.bf16.msra.mxu0 %v1007_v24  ;;  %v1060_v24 = vld [vmem:[#allocation2 + $0xb8] sm:$0xff]  }
  0x2d   :  { %394 = vmatprep.subr.bf16.mxu0 %v1015_v27  ;;  %v163_v27 = vsub.s32 0, %v162_v26 }
  0x2e   :  { %354 = vmatpush1.bf16.msra.mxu1 %v1022_v33 }
  0x2f   :  { %355 = vmatprep.subr.bf16.mxu1 %v1023_v34  ;;  %v168_v34 = vrot.slane %v159_v29, %v167_v30 }
  0x30   :  { %395 = vmatpush1.bf16.msra.mxu0 %v1013_v28  ;;  %v171_v28 = vsub.s32 2, %v162_v26 }
  0x31   :  { %396 = vmatprep.subr.bf16.mxu0 %v1021_v31  ;;  %v175_v31 = vsub.s32 3, %v162_v26 }
  0x32   :  { %356 = vmatpush1.bf16.msra.mxu1 %v1028_v37  ;;  %v172_v33 = vrot.slane %v159_v29, %v171_v28 }
  0x33   :  { %921 = vmatprep.subr.bf16.mxu1 %v1029_v57 }
  0x34   :  { %397 = vmatpush1.bf16.msra.mxu0 %v1019_v32  ;;  %v164_v32 = vrot.slane %v159_v29, %v163_v27 }
  0x35   :  { %398 = vmatprep.subr.bf16.mxu0 %v1027_v35  ;;  %v176_v35 = vrot.slane %v159_v29, %v175_v31 }
  0x38   :  { %399 = vmatpush1.bf16.msra.mxu0 %v1025_v36 }
  0x39   :  { %943 = vmatprep.subr.bf16.mxu0 %v1030_v58 }
  0xee   :  { %v105_v40 = vpop.f32.mrb[0].mxu0 }
  0xef   :  { %v106_v41 = vadd.f32 %v839_v39, %v105_v40  ;;  %v971_v42 = vpop.f32.mrb[1].mxu0 }
  0xf0   :  { %v108_v43 = vpop.f32.mrb[2].mxu0 }
  0xf1   :  { %v843_v44 = vmul.f32 -1.442695, %v106_v41  ;;  %v109_v45 = vadd.f32 %v839_v39, %v108_v43  ;;  %v972_v46 = vpop.f32.mrb[3].mxu0 }
  0xf3   :  { %1061 = vpow2.f32 %v843_v44  ;;  %v844_v47 = vmul.f32 -1.442695, %v109_v45 }
  0xf5   :  { %1063 = vpow2.f32 %v844_v47 }
  0xfd   :  { %v1062_v48 = vpop.eup %1061 }
  0xfe   :  { %v118_v49 = vadd.f32 1.0, %v1062_v48 }
  0xff   :  { %v1064_v50 = vpop.eup %1063 }
 0x100   :  { %1065 = vrcp.f32 %v118_v49  ;;  %v119_v51 = vadd.f32 1.0, %v1064_v50 }
 0x102   :  { %1067 = vrcp.f32 %v119_v51 }
 0x10a   :  { %v1066_v52 = vpop.eup %1065 }
 0x10b   :  { %v124_v54 = vmul.f32 %v1066_v52, %v106_v41 }
 0x10c   :  { %v1068_v53 = vpop.eup %1067 }
 0x10d   :  { %v125_v55 = vmul.f32 %v1068_v53, %v109_v45 }
 0x10f   :  { %v126_v56 = vpack.c.bf16 %v125_v55, %v124_v54 }
 0x111   :  { %374 = vmatmul.mubr.bf16.vlgmr.msra.gmra.mrb[0].mxu1 %v126_v56  ;;  %417 = vmatmul.mubr.bf16.vlgmr.msra.gmra.mrb[4].mxu0 %v126_v56 }
 0x112   :  { %922 = vmatpush3.bf16.msra.mxu1 %v1031_v59  ;;  %944 = vmatpush3.bf16.msra.mxu0 %v1032_v60 }
 0x113   :  { %923 = vmatprep.subr.bf16.mxu1 %v1033_v61  ;;  %945 = vmatprep.subr.bf16.mxu0 %v1034_v62 }
 0x116   :  { %924 = vmatpush3.bf16.msra.mxu1 %v1035_v63  ;;  %946 = vmatpush3.bf16.msra.mxu0 %v1036_v0 }
 0x117   :  { %925 = vmatprep.subr.bf16.mxu1 %v1037_v1  ;;  %947 = vmatprep.subr.bf16.mxu0 %v1038_v2 }
 0x11a   :  { %926 = vmatpush3.bf16.msra.mxu1 %v1039_v3  ;;  %948 = vmatpush3.bf16.msra.mxu0 %v1040_v4 }
 0x11b   :  { %927 = vmatprep.subr.bf16.mxu1 %v1041_v5  ;;  %949 = vmatprep.subr.bf16.mxu0 %v1042_v6 }
 0x11e   :  { %928 = vmatpush3.bf16.msra.mxu1 %v1043_v7  ;;  %950 = vmatpush3.bf16.msra.mxu0 %v1044_v8 }
 0x11f   :  { %929 = vmatprep.subr.bf16.mxu1 %v1045_v9  ;;  %951 = vmatprep.subr.bf16.mxu0 %v1046_v10 }
 0x122   :  { %930 = vmatpush3.bf16.msra.mxu1 %v1047_v11  ;;  %952 = vmatpush3.bf16.msra.mxu0 %v1048_v12 }
 0x123   :  { %931 = vmatprep.subr.bf16.mxu1 %v1049_v13  ;;  %953 = vmatprep.subr.bf16.mxu0 %v1050_v14 }
 0x126   :  { %932 = vmatpush3.bf16.msra.mxu1 %v1051_v15  ;;  %954 = vmatpush3.bf16.msra.mxu0 %v1052_v16 }
 0x127   :  { %933 = vmatprep.subr.bf16.mxu1 %v1053_v17  ;;  %955 = vmatprep.subr.bf16.mxu0 %v1054_v18 }
 0x12a   :  { %934 = vmatpush3.bf16.msra.mxu1 %v1055_v19  ;;  %956 = vmatpush3.bf16.msra.mxu0 %v1056_v20 }
 0x12b   :  { %935 = vmatprep.subr.bf16.mxu1 %v1057_v21  ;;  %957 = vmatprep.subr.bf16.mxu0 %v1058_v22 }
 0x12e   :  { %936 = vmatpush3.bf16.msra.mxu1 %v1059_v23  ;;  %958 = vmatpush3.bf16.msra.mxu0 %v1060_v24 }
 0x1e4   :  { %v375_v36 = vpop.f32.mrb[0].mxu1  ;;  %v418_v37 = vpop.f32.mrb[4].mxu0 }
 0x1e5   :  { %v376_v38 = vadd.f32 %v375_v36, %v164_v32  ;;  %v419_v39 = vadd.f32 %v418_v37, %v172_v33  ;;  %v377_v40 = vpop.f32.mrb[1].mxu1  ;;  %v420_v41 = vpop.f32.mrb[5].mxu0 }
 0x1e6   :  { %v378_v42 = vadd.f32 %v377_v40, %v168_v34  ;;  %v1297_v43 = vadd.f32 %v420_v41, %v176_v35  ;;  %v379_v44 = vpop.f32.mrb[2].mxu1  ;;  %v422_v45 = vpop.f32.mrb[6].mxu0 }
 0x1e7   :  { %v877_v46 = vmul.f32 -1.442695, %v376_v38  ;;  %v879_v47 = vmul.f32 -1.442695, %v419_v39  ;;  %v380_v48 = vadd.f32 %v379_v44, %v164_v32  ;;  %v423_v49 = vadd.f32 %v422_v45, %v172_v33  ;;  %v381_v50 = vpop.f32.mrb[3].mxu1  ;;  %v424_v51 = vpop.f32.mrb[7].mxu0 }
 0x1e8   :  { %v878_v52 = vmul.f32 -1.442695, %v378_v42  ;;  %v880_v53 = vmul.f32 -1.442695, %v1297_v43  ;;  %v382_v54 = vadd.f32 %v381_v50, %v168_v34  ;;  %v425_v55 = vadd.f32 %v424_v51, %v176_v35  ;;  %v885_v34 = vld [vmem:[%s1316_s6] ss:$0 sm:$0xff] }
 0x1e9   :  { %1069 = vpow2.f32 %v877_v46  ;;  %v881_v56 = vmul.f32 -1.442695, %v380_v48  ;;  %v883_v57 = vmul.f32 -1.442695, %v423_v49 }
 0x1ea   :  { %1071 = vpow2.f32 %v879_v47  ;;  %v882_v58 = vmul.f32 -1.442695, %v382_v54  ;;  %v884_v59 = vmul.f32 -1.442695, %v425_v55 }
 0x1eb   :  { %1073 = vpow2.f32 %v878_v52 }
 0x1ec   :  { %1075 = vpow2.f32 %v880_v53 }
 0x1ed   :  { %1077 = vpow2.f32 %v881_v56 }
 0x1ee   :  { %1079 = vpow2.f32 %v883_v57 }
 0x1ef   :  { %1081 = vpow2.f32 %v882_v58 }
 0x1f0   :  { %1083 = vpow2.f32 %v884_v59 }
 0x1f3   :  { %v1070_v60 = vpop.eup %1069 }
 0x1f4   :  { %v1072_v61 = vpop.eup %1071  ;;  %v451_v62 = vadd.f32 1.0, %v1070_v60 }
 0x1f5   :  { %v1074_v63 = vpop.eup %1073  ;;  %v453_v0 = vadd.f32 1.0, %v1072_v61 }
 0x1f6   :  { %v1076_v1 = vpop.eup %1075  ;;  %1085 = vrcp.f32 %v451_v62  ;;  %v452_v2 = vadd.f32 1.0, %v1074_v63 }
 0x1f7   :  { %v1078_v3 = vpop.eup %1077  ;;  %1087 = vrcp.f32 %v453_v0  ;;  %v454_v4 = vadd.f32 1.0, %v1076_v1 }
 0x1f8   :  { %v1080_v5 = vpop.eup %1079  ;;  %1089 = vrcp.f32 %v452_v2  ;;  %v455_v6 = vadd.f32 1.0, %v1078_v3 }
 0x1f9   :  { %v1082_v7 = vpop.eup %1081  ;;  %1091 = vrcp.f32 %v454_v4  ;;  %v457_v8 = vadd.f32 1.0, %v1080_v5 }
 0x1fa   :  { %v1084_v9 = vpop.eup %1083  ;;  %1093 = vrcp.f32 %v455_v6  ;;  %v456_v10 = vadd.f32 1.0, %v1082_v7 }
 0x1fb   :  { %1095 = vrcp.f32 %v457_v8  ;;  %v458_v11 = vadd.f32 1.0, %v1084_v9 }
 0x1fc   :  { %1097 = vrcp.f32 %v456_v10 }
 0x1fd   :  { %1099 = vrcp.f32 %v458_v11 }
 0x200   :  { %v1086_v12 = vpop.eup %1085 }
 0x201   :  { %v1088_v13 = vpop.eup %1087  ;;  %v475_v18 = vmul.f32 %v1086_v12, %v376_v38 }
 0x202   :  { %v1090_v14 = vpop.eup %1089  ;;  %v477_v21 = vmul.f32 %v1088_v13, %v419_v39 }
 0x203   :  { %v1092_v15 = vpop.eup %1091  ;;  %v476_v24 = vmul.f32 %v1090_v14, %v378_v42 }
 0x204   :  { %v1094_v16 = vpop.eup %1093  ;;  %v478_v27 = vmul.f32 %v1092_v15, %v1297_v43 }
 0x205   :  { %v1096_v17 = vpop.eup %1095  ;;  %v479_v19 = vmul.f32 %v1094_v16, %v380_v48 }
 0x206   :  { %v1098_v20 = vpop.eup %1097  ;;  %v481_v22 = vmul.f32 %v1096_v17, %v423_v49 }
 0x207   :  { %v1100_v23 = vpop.eup %1099  ;;  %v483_v25 = vpack.c.bf16 %v479_v19, %v475_v18  ;;  %v480_v26 = vmul.f32 %v1098_v20, %v382_v54 }
 0x208   :  { %v485_v28 = vpack.c.bf16 %v481_v22, %v477_v21  ;;  %v482_v29 = vmul.f32 %v1100_v23, %v425_v55 }
 0x209   :  { %v484_v30 = vpack.c.bf16 %v480_v26, %v476_v24 }
 0x20a   :  { %v486_v31 = vpack.c.bf16 %v482_v29, %v478_v27 }
 0x20b   :  { %782 = vmatprep.mubr.bf16.mxu1 %v484_v30 }
 0x20c   :  { %823 = vmatprep.mubr.bf16.mxu0 %v486_v31  ;;  %783 = vmatmul.mubr.bf16.vlgmr.msra.gmra.mrb[4].mxu1 %v483_v25 }
 0x20d   :  { %824 = vmatmul.mubr.bf16.vlgmr.msra.gmra.mrb[8].mxu0 %v485_v28 }
 0x2df   :  { %v937_v32 = vpop.f32.mrb[4].mxu1 }
 0x2e0   :  { %v959_v33 = vpop.f32.mrb[8].mxu0  ;;  %v938_v35 = vpop.f32.mrb[5].mxu1 }
 0x2e1   :  { %v939_v36 = vadd.f32 %v938_v35, %v937_v32  ;;  %v960_v37 = vpop.f32.mrb[9].mxu0  ;;  %v940_v38 = vpop.f32.mrb[6].mxu1 }
 0x2e2   :  { %v961_v39 = vadd.f32 %v960_v37, %v959_v33  ;;  %v962_v40 = vpop.f32.mrb[10].mxu0  ;;  %v941_v41 = vpop.f32.mrb[7].mxu1 }
 0x2e3   :  { %v785_v42 = vadd.f32 %v939_v36, %v885_v34  ;;  %v942_v43 = vadd.f32 %v941_v41, %v940_v38  ;;  %v963_v44 = vpop.f32.mrb[11].mxu0 }
 0x2e4   :  { %v964_v45 = vadd.f32 %v963_v44, %v962_v40 }
 0x2e5   :  { %v826_v46 = vadd.f32 %v961_v39, %v785_v42  ;;  %v788_v47 = vadd.f32 %v942_v43, %v885_v34 }
 0x2e7   :  { %832 = vst [vmem:[%s1317_s7] sm:$0xff] %v826_v46  ;;  %v829_v48 = vadd.f32 %v964_v45, %v788_v47 }
 0x2e9   :  { %833 = vst [vmem:[%s1317_s7 + $0x8] sm:$0xff] %v829_v48 }
 0x2ea   :  { %838 = vsyncpa [#allocation3], 1 }

</bundles_post_ra>
